<compile_context>
chip_gen: v7x
topology: tpu7x:2x2x1
jax: 0.10.0
libtpu: 0.0.40
codegen_flags: <defaults>
</compile_context>

<pallas_src>
import functools

import jax
import jax.numpy as jnp
from jax.experimental import pallas as pl
from jax.experimental.pallas import tpu as pltpu


def _sublane_multiple(itemsize):
    # f32 -> 8 sublanes, bf16 -> 16, int8/fp8 -> 32.
    return max(8, 32 // max(1, itemsize))


def _pick_tile_rows(batch, num_classes, itemsize, target_bytes=4 << 20):
    """Pick a batch tile so one (double-buffered) logits tile is ~target_bytes."""
    sub = _sublane_multiple(itemsize)
    rows = target_bytes // max(1, num_classes * itemsize)
    rows = (rows // sub) * sub
    rows = max(sub, min(rows, 1024))
    padded_b = ((batch + sub - 1) // sub) * sub
    return max(sub, min(rows, padded_b))


def _ce_ls_kernel(x_ref, t_ref, out_ref, acc_ref, *, epsilon, num_classes,
                  batch_size, use_label_smoothing):
    i = pl.program_id(0)

    @pl.when(i == 0)
    def _():
        acc_ref[...] = jnp.zeros_like(acc_ref)

    x = x_ref[...].astype(jnp.float32)                 # (TB, C)
    t = t_ref[...]                                     # (TB, 1) int32
    tb = x.shape[0]

    # Mask rows of a ragged last tile (block may extend past B).
    row_ids = i * tb + jax.lax.broadcasted_iota(jnp.int32, (tb, 1), 0)
    row_valid = row_ids < batch_size                   # (TB, 1) bool

    # Numerically stable row stats along the class (lane) axis.
    m = jnp.max(x, axis=1, keepdims=True)              # (TB, 1)
    shifted = x - m                                    # (TB, C)
    lse = jnp.log(jnp.sum(jnp.exp(shifted), axis=1, keepdims=True))  # (TB, 1)

    # Gather shifted logit at the target class: iota compare + row-sum
    # (no scatter / full one-hot tensor needed).
    class_ids = jax.lax.broadcasted_iota(jnp.int32, x.shape, 1)
    x_t_shifted = jnp.sum(jnp.where(class_ids == t, shifted, 0.0),
                          axis=1, keepdims=True)       # (TB, 1)

    # Closed-form per-row loss:
    #   -(1-eps) * log p[t]  -  (eps/C) * sum_c log p_c
    nll_t = lse - x_t_shifted                          # -log p[target]
    if use_label_smoothing:
        sum_shifted = jnp.sum(shifted, axis=1, keepdims=True)
        uniform_term = lse - sum_shifted * (1.0 / num_classes)
        row_loss = (1.0 - epsilon) * nll_t + epsilon * uniform_term
    else:
        row_loss = nll_t

    row_loss = jnp.where(row_valid, row_loss, 0.0)     # drop padded rows
    acc_ref[...] += jnp.sum(row_loss, axis=0, keepdims=True)   # (1, 1)

    @pl.when(i == pl.num_programs(0) - 1)
    def _():
        # Divide by the GLOBAL batch size (reference: .mean(0).sum()).
        out_ref[...] = acc_ref[...] / jnp.float32(batch_size)


def cross_entropy_label_smooth(outputs, targets, *, num_classes, epsilon=0.1,
                               use_label_smoothing=True, tile_rows=None):
    """outputs: (B, C) float (f32 or bf16), targets: (B,) int. Scalar f32 loss."""
    B, C = outputs.shape
    assert C == num_classes
    itemsize = jnp.dtype(outputs.dtype).itemsize
    if tile_rows is None:
        tile_rows = _pick_tile_rows(B, C, itemsize)
    assert tile_rows % _sublane_multiple(itemsize) == 0
    num_tiles = pl.cdiv(B, tile_rows)

    targets_2d = targets.astype(jnp.int32).reshape(B, 1)

    kernel = functools.partial(
        _ce_ls_kernel,
        epsilon=float(epsilon),
        num_classes=int(num_classes),
        batch_size=int(B),
        use_label_smoothing=bool(use_label_smoothing),
    )

    out = pl.pallas_call(
        kernel,
        out_shape=jax.ShapeDtypeStruct((1, 1), jnp.float32),
        grid=(num_tiles,),
        in_specs=[
            pl.BlockSpec((tile_rows, C), lambda i: (i, 0)),   # logits tile
            pl.BlockSpec((tile_rows, 1), lambda i: (i, 0)),   # labels tile
        ],
        out_specs=pl.BlockSpec((1, 1), lambda i: (0, 0)),     # resident scalar
        scratch_shapes=[pltpu.VMEM((1, 1), jnp.float32)],     # loss accumulator
        compiler_params=pltpu.CompilerParams(
            dimension_semantics=("arbitrary",)),              # carried accumulator
        cost_estimate=pl.CostEstimate(
            flops=8 * B * C,
            transcendentals=B * C,
            bytes_accessed=B * C * itemsize + B * 4 + 4),
    )(outputs, targets_2d)
    return out[0, 0]


def _reference(outputs, targets, num_classes, epsilon=0.1,
               use_label_smoothing=True):
    log_probs = jax.nn.log_softmax(outputs.astype(jnp.float32), axis=1)
    onehot = jax.nn.one_hot(targets, num_classes, dtype=jnp.float32)
    if use_label_smoothing:
        onehot = (1.0 - epsilon) * onehot + epsilon / num_classes
    return (-onehot * log_probs).mean(0).sum()


if __name__ == "__main__":
    # Small deterministic example: (batch, num_classes) logits + int labels.
    # batch=20 with tile_rows=8 -> grid of 3 tiles incl. a ragged last tile,
    # exercising both the pipelined multi-tile path and the row masking.
    batch, num_classes = 20, 384
    key = jax.random.PRNGKey(0)
    k_logits, k_labels = jax.random.split(key)
    outputs = jax.random.normal(k_logits, (batch, num_classes), jnp.float32)
    targets = jax.random.randint(k_labels, (batch,), 0, num_classes, jnp.int32)

    # f32, label smoothing on.
    loss = cross_entropy_label_smooth(
        outputs, targets, num_classes=num_classes, epsilon=0.1,
        use_label_smoothing=True, tile_rows=8)
    loss = jax.block_until_ready(loss)
    ref = _reference(outputs, targets, num_classes, 0.1, True)
    assert jnp.allclose(loss, ref, rtol=1e-5, atol=1e-5), (loss, ref)

    # Label smoothing off (plain cross entropy branch).
    loss_ns = cross_entropy_label_smooth(
        outputs, targets, num_classes=num_classes, epsilon=0.1,
        use_label_smoothing=False, tile_rows=8)
    loss_ns = jax.block_until_ready(loss_ns)
    ref_ns = _reference(outputs, targets, num_classes, 0.1, False)
    assert jnp.allclose(loss_ns, ref_ns, rtol=1e-5, atol=1e-5), (loss_ns, ref_ns)

    # bf16 logits (halves HBM traffic); kernel upcasts to f32 internally.
    outputs_bf16 = outputs.astype(jnp.bfloat16)
    loss_bf = cross_entropy_label_smooth(
        outputs_bf16, targets, num_classes=num_classes, epsilon=0.1,
        use_label_smoothing=True, tile_rows=16)
    loss_bf = jax.block_until_ready(loss_bf)
    ref_bf = _reference(outputs_bf16.astype(jnp.float32), targets,
                        num_classes, 0.1, True)
    assert jnp.allclose(loss_bf, ref_bf, rtol=1e-4, atol=1e-4), (loss_bf, ref_bf)

    print("KERNEL_OK")
</pallas_src>

<mosaic_0001>
module attributes {stable_mosaic.version = 11 : i64} {
  func.func @_ce_ls_kernel(%arg0: i32, %arg1: memref<8x384xf32, #tpu.memory_space<vmem>>, %arg2: memref<8x1xi32, #tpu.memory_space<vmem>>, %arg3: memref<1x1xf32, #tpu.memory_space<vmem>>, %arg4: memref<1x1xf32, #tpu.memory_space<vmem>>) attributes {dimension_semantics = [#tpu.dimension_semantics<arbitrary>], iteration_bounds = array<i64: 3>, scalar_prefetch = 0 : i64, scratch_operands = 1 : i64, tpu.core_type = #tpu.core_type<tc>, window_params = [{transform_indices = @transform_0, window_bounds = array<i64: 8, 384>}, {transform_indices = @transform_1, window_bounds = array<i64: 8, 1>}, {pipeline_mode = #tpu.pipeline_mode<synchronous>, transform_indices = @transform_2, window_bounds = array<i64: 1, 1>}]} {
    %c0_i32 = arith.constant 0 : i32
    %0 = arith.cmpi eq, %arg0, %c0_i32 : i32
    %1 = arith.extui %0 : i1 to i32
    %c0_i32_0 = arith.constant 0 : i32
    %2 = arith.cmpi ne, %1, %c0_i32_0 : i32
    scf.if %2 {
      %cst_18 = arith.constant 0.000000e+00 : f32
      %47 = vector.broadcast %cst_18 : f32 to vector<1x1xf32>
      %c0_19 = arith.constant 0 : index
      %c0_20 = arith.constant 0 : index
      %48 = vector.load %arg4[%c0_19, %c0_20] : memref<1x1xf32, #tpu.memory_space<vmem>>, vector<1x1xf32>
      tpu.vector_store %arg4[%c0_19, %c0_20], %47 {strides = array<i32>} : memref<1x1xf32, #tpu.memory_space<vmem>>, vector<1x1xf32>,
    } else {
    }
    %c0 = arith.constant 0 : index
    %c0_1 = arith.constant 0 : index
    %3 = vector.load %arg1[%c0, %c0_1] : memref<8x384xf32, #tpu.memory_space<vmem>>, vector<8x384xf32>
    %c0_2 = arith.constant 0 : index
    %c0_3 = arith.constant 0 : index
    %4 = vector.load %arg2[%c0_2, %c0_3] : memref<8x1xi32, #tpu.memory_space<vmem>>, vector<8x1xi32>
    %c8_i32 = arith.constant 8 : i32
    %5 = arith.muli %arg0, %c8_i32 : i32
    %6 = tpu.iota {dimensions = array<i32: 0>} : vector<8x1xi32>
    %7 = vector.broadcast %5 : i32 to vector<8x1xi32>
    %8 = arith.addi %7, %6 : vector<8x1xi32>
    %c20_i32 = arith.constant 20 : i32
    %9 = vector.broadcast %c20_i32 : i32 to vector<8x1xi32>
    %10 = arith.cmpi slt, %8, %9 : vector<8x1xi32>
    %cst = arith.constant dense<0xFF800000> : vector<8xf32>
    %11 = vector.multi_reduction <maximumf>, %3, %cst [1] : vector<8x384xf32> to vector<8xf32>
    %12 = vector.shape_cast %11 : vector<8xf32> to vector<8x1xf32>
    %13 = vector.broadcast %12 : vector<8x1xf32> to vector<8x384xf32>
    %14 = arith.subf %3, %13 : vector<8x384xf32>
    %15 = math.exp %14 : vector<8x384xf32>
    %cst_4 = arith.constant dense<0.000000e+00> : vector<8xf32>
    %16 = vector.multi_reduction <add>, %15, %cst_4 [1] : vector<8x384xf32> to vector<8xf32>
    %17 = vector.shape_cast %16 : vector<8xf32> to vector<8x1xf32>
    %18 = math.log %17 : vector<8x1xf32>
    %19 = tpu.iota {dimensions = array<i32: 1>} : vector<8x384xi32>
    %20 = vector.broadcast %4 : vector<8x1xi32> to vector<8x384xi32>
    %21 = arith.cmpi eq, %19, %20 : vector<8x384xi32>
    %cst_5 = arith.constant 0.000000e+00 : f32
    %22 = vector.broadcast %cst_5 : f32 to vector<8x384xf32>
    %23 = arith.select %21, %14, %22 : vector<8x384xi1>, vector<8x384xf32>
    %cst_6 = arith.constant dense<0.000000e+00> : vector<8xf32>
    %24 = vector.multi_reduction <add>, %23, %cst_6 [1] : vector<8x384xf32> to vector<8xf32>
    %25 = vector.shape_cast %24 : vector<8xf32> to vector<8x1xf32>
    %26 = arith.subf %18, %25 : vector<8x1xf32>
    %cst_7 = arith.constant dense<0.000000e+00> : vector<8xf32>
    %27 = vector.multi_reduction <add>, %14, %cst_7 [1] : vector<8x384xf32> to vector<8xf32>
    %28 = vector.shape_cast %27 : vector<8xf32> to vector<8x1xf32>
    %cst_8 = arith.constant 0.00260416674 : f32
    %29 = vector.broadcast %cst_8 : f32 to vector<8x1xf32>
    %30 = arith.mulf %28, %29 : vector<8x1xf32>
    %31 = arith.subf %18, %30 : vector<8x1xf32>
    %cst_9 = arith.constant 0.899999976 : f32
    %32 = vector.broadcast %cst_9 : f32 to vector<8x1xf32>
    %33 = arith.mulf %32, %26 : vector<8x1xf32>
    %cst_10 = arith.constant 1.000000e-01 : f32
    %34 = vector.broadcast %cst_10 : f32 to vector<8x1xf32>
    %35 = arith.mulf %34, %31 : vector<8x1xf32>
    %36 = arith.addf %33, %35 : vector<8x1xf32>
    %cst_11 = arith.constant 0.000000e+00 : f32
    %37 = vector.broadcast %cst_11 : f32 to vector<8x1xf32>
    %38 = arith.select %10, %36, %37 : vector<8x1xi1>, vector<8x1xf32>
    %c0_12 = arith.constant 0 : index
    %c0_13 = arith.constant 0 : index
    %39 = vector.load %arg4[%c0_12, %c0_13] : memref<1x1xf32, #tpu.memory_space<vmem>>, vector<1x1xf32>
    %cst_14 = arith.constant dense<0.000000e+00> : vector<1xf32>
    %40 = vector.multi_reduction <add>, %38, %cst_14 [0] : vector<8x1xf32> to vector<1xf32>
    %41 = vector.shape_cast %40 : vector<1xf32> to vector<1x1xf32>
    %42 = arith.addf %39, %41 : vector<1x1xf32>
    %c0_15 = arith.constant 0 : index
    %c0_16 = arith.constant 0 : index
    %43 = vector.load %arg4[%c0_15, %c0_16] : memref<1x1xf32, #tpu.memory_space<vmem>>, vector<1x1xf32>
    tpu.vector_store %arg4[%c0_15, %c0_16], %42 {strides = array<i32>} : memref<1x1xf32, #tpu.memory_space<vmem>>, vector<1x1xf32>,
    %c2_i32 = arith.constant 2 : i32
    %44 = arith.cmpi eq, %arg0, %c2_i32 : i32
    %45 = arith.extui %44 : i1 to i32
    %c0_i32_17 = arith.constant 0 : i32
    %46 = arith.cmpi ne, %45, %c0_i32_17 : i32
    scf.if %46 {
      %c0_18 = arith.constant 0 : index
      %c0_19 = arith.constant 0 : index
      %47 = vector.load %arg4[%c0_18, %c0_19] : memref<1x1xf32, #tpu.memory_space<vmem>>, vector<1x1xf32>
      %cst_20 = arith.constant 2.000000e+01 : f32
      %48 = vector.broadcast %cst_20 : f32 to vector<1x1xf32>
      %49 = arith.divf %47, %48 : vector<1x1xf32>
      %c0_21 = arith.constant 0 : index
      %c0_22 = arith.constant 0 : index
      %50 = vector.load %arg3[%c0_21, %c0_22] : memref<1x1xf32, #tpu.memory_space<vmem>>, vector<1x1xf32>
      tpu.vector_store %arg3[%c0_21, %c0_22], %49 {strides = array<i32>} : memref<1x1xf32, #tpu.memory_space<vmem>>, vector<1x1xf32>,
    } else {
    }
    return
  }
  func.func @transform_0(%arg0: i32) -> (i32, i32) {
    %c0_i32 = arith.constant 0 : i32
    %c0_i32_0 = arith.constant 0 : i32
    return %arg0, %c0_i32 : i32, i32
  }
  func.func @transform_1(%arg0: i32) -> (i32, i32) {
    %c0_i32 = arith.constant 0 : i32
    %c0_i32_0 = arith.constant 0 : i32
    return %arg0, %c0_i32 : i32, i32
  }
  func.func @transform_2(%arg0: i32) -> (i32, i32) {
    %c0_i32 = arith.constant 0 : i32
    %c0_i32_0 = arith.constant 0 : i32
    %c0_i32_1 = arith.constant 0 : i32
    return %c0_i32, %c0_i32_0 : i32, i32
  }
}

</mosaic_0001>

<bundles_post_ra>
// kernel: tpu_custom_call.1
= control target key start
LH: loop header
LB: loop body
LE: loop exit
PB: predicated region body
PF: predicated region fallthrough
CT: control target
= control target key end

     0   :  { %7 = vsyncpa [#allocation4], 0  ;;  %s634_s0 = inlined_call_operand.hbm [shape: f32[20,384], index: 0, kind: input, shape index: {}]   ;;  %s635_s1 = inlined_call_operand.vmem [shape: s32[20,1], index: 1, kind: input, shape index: {}]   ;;  %s636_s2 = inlined_call_operand.hbm [shape: f32[1,1], index: 2, kind: output, shape index: {}]  }
   0x1   :  { %9 = vsyncpa [#allocation4 + $0x1], 0 }
   0x2   :  { %10 = vsyncpa [#allocation5], 0  ;;  %s503_s9 = smov 0   ;;  %s505_s10 = smov 0  }
   0x3   :  { %s507_s11 = smov 0   ;;  %s509_s12 = smov 0  }
   0x4 LB: > { %s522_s13 = sadd.s32 4294967295, %s482_s12   ;;  %s525_s14 = sadd.s32 1, %s482_s12   ;;  %s482_s12 = sphi %s509_s12, %s643_s12   ;;  %s478_s11 = sphi %s507_s11, %s642_s11   ;;  %s474_s10 = sphi %s505_s10, %s641_s10   ;;  %s470_s9 = sphi %s503_s9, %s640_s9  }
   0x5   : > { %s20_s15 = ssub.s32 %s482_s12, %s525_s14  ;;  %s23_s16 = sadd.s32 1, %s478_s11 }
   0x6   : > { %p21_p0 = scmp.eq.s32.totalorder %s20_s15, 0  ;;  %p30_p1 = scmp.ne.s32.totalorder %s478_s11, %s474_s10 }
   0x7   : > { %p31_p2 = scmp.eq.s32.totalorder %s482_s12, 0  ;;  %p36_p3 = scmp.ne.s32.totalorder %s474_s10, %s470_s9 }
   0x8   : > { %s535_s17 = scalar_select %p21_p0, %s478_s11, %s23_s16  }
   0x9   : > { %p32_p4 = por %p31_p2, %p30_p1  ;;  %p37_p5 = scmp.eq.s32.totalorder %s522_s13, 0 }
   0xa   : > { %p341_p6 = scmp.lt.s32.totalorder %s482_s12, 3  ;;  %s107_s19 = sand.u32 1, %s478_s11  }
   0xb   : > { %p539_p7 = por %p37_p5, %p36_p3  ;;  %s328_s20 = smul.u32 24, %s107_s19 }
   0xc   : > { %s329_s21 = smul.u32 384, %s482_s12  ;;  %p545_p8 = pnand %p341_p6, %p32_p4 }
   0xd   : > { %s111_s26 = scalar_lea.vmem [#allocation3], %s328_s20  ;;  %s108_s28 = scalar_lea.sflag [#allocation4], %s107_s19 }
   0xe   : > { %s553_s25 = scalar_lea.hbm %s634_s0, %s329_s21  ;;  %s119_s27 = sshll.u32 %s111_s26, 4  ;;  %s555_s27 = int_to_ptr.vmem [resolvable:$true] %s119_s27 }
   0xf   : > { %s388_s29 = scalar_lea.hbm %s553_s25, 384  ;;  %p390_p11 = pneg %p545_p8 }
  0x10   : > { %p389_p10 = scmp.ne.s32.totalorder %s553_s25, %s388_s29  ;;  %s393_s4 = scalar_lea.hbm %s634_s0, 1152 }
  0x11   : > { %p394_p0 = scmp.lt.u32.totalorder %s553_s25, %s634_s0  ;;  %p395_p1 = scmp.lt.u32.totalorder %s393_s4, %s388_s29 }
  0x12   : > { %p391_p12 = pnand %p390_p11, %p389_p10  ;;  %p397_p3 = scmp.lt.u32.totalorder %s388_s29, %s553_s25 }
  0x13   : > { %p396_p2 = por %p395_p1, %p394_p0 }
  0x14   : > { %p392_p13 = pneg %p391_p12 }
  0x15   : > { %p398_p4 = por %p397_p3, %p396_p2 }
  0x17   : > { %p399_p5 = pnand %p398_p4, %p392_p13 }
  0x19   : > { %402 = shalt.err (!%p399_p5)
}
  0x1a   : > { %s403_s7 = scalar_lea.vmem %s555_s27, 384  ;;  %s484_s8 = smov [#allocation3]  }
  0x1b   : > { %p404_p6 = scmp.ne.s32.totalorder %s555_s27, %s403_s7  ;;  %s408_s9 = sshll.u32 %s484_s8, 4  ;;  %s409_s9 = int_to_ptr.vmem [resolvable:$false] %s408_s9 }
  0x1c   : > { %s410_s15 = scalar_lea.vmem %s409_s9, 768  ;;  %p411_p9 = scmp.lt.s32.totalorder %s555_s27, %s409_s9 }
  0x1d   : > { %p406_p10 = pnand %p404_p6, %p390_p11  ;;  %p412_p0 = scmp.lt.s32.totalorder %s410_s15, %s403_s7 }
  0x1f   : > { %p407_p12 = pneg %p406_p10  ;;  %p413_p1 = por %p412_p0, %p411_p9 }
  0x21   : > { %p414_p2 = pnand %p413_p1, %p407_p12 }
  0x23   : > { %417 = shalt.err (!%p414_p2)
}
  0x24   : > { %340 = dma.hbm_to_vmem [thread:$0]  (!%p545_p8), %s553_s25, 384, %s555_s27, %s108_s28  }
  0x25   : > { %p131_p13 = scmp.lt.s32.totalorder %s482_s12, 4  ;;  %p639_p3 = scmp.ge.s32.totalorder %s482_s12, 1 }
  0x27   : > { %p132_p11 = pnand %p639_p3, %p131_p13 }
  0x28   : > { %s137_s16 = sand.u32 (!%p132_p11), 1, %s474_s10  }
  0x29   : > { %135 = sbr.rel (%p132_p11) target bundleno = 438 (0x1b6), region = 28  ;;  %s138_s20 = scalar_lea.sflag (!%p132_p11), [#allocation4], %s137_s16 }
  0x2a   : > { %s330_s19 = smul.u32 (!%p132_p11), 24, %s137_s16 }
  0x2c   : > { %s141_s21 = scalar_lea.vmem (!%p132_p11), [#allocation3], %s330_s19 }
  0x30   : > { %461 = dma.done.wait (%p539_p7), %s138_s20, 384  }
  0x31   : > { %463 = vsyncadd (%p539_p7), %s138_s20, 4294966912  ;;  %p161_p9 = scmp.lt.s32.totalorder %s522_s13, 2  ;;  %p321_p8 = scmp.ne.s32.totalorder %s522_s13, 0 }
  0x32   : > { %vm169_vm0 = vcmask (!%p321_p8), 0   ;;  %v485_v0 = vmov (!%p321_p8), 0.0  }
  0x33   : > { %s162_s22 = scalar_select %p161_p9, %s522_s13, 2 }
  0x34   : > { %168 = sbr.rel (%p321_p8) target bundleno = 59 (0x3b), region = 36  ;;  %170 = vst.msk [vmem:[#allocation2] sm:$0x1] (!%p321_p8), %vm169_vm0, %v485_v0 }
  0x35   : > { %s320_s23 = sshll.u32 %s162_s22, 3 }
  0x36   : > { %s164_s25 = scalar_lea.vmem %s635_s1, %s320_s23 }
  0x3b PF: > { %v171_v1 = vld [vmem:[%s141_s21] sm:$0xff]  ;;  %v172_v2 = vld [vmem:[%s141_s21 + $0x8] sm:$0xff]  ;;  %v173_v3 = vld [vmem:[%s141_s21 + $0x10] sm:$0xff]  ;;  %v486_v5 = vmov 0   ;;  %v176_v15 = vlaneseq  ;;  %s322_s18 = sshll.u32 %s522_s13, 3  ;;  %vm236_vm5 = vcmask 0  }
  0x3c   : > { %v181_v4 = vmax.f32 %v171_v1, %v172_v2  ;;  %379 = vset.pattern.permute.xlu0 %v486_v5  ;;  %v174_v7 = vld [vmem:[%s164_s25] sm:$0xff]  ;;  %v178_v35 = vstv %s322_s18  ;;  %p323_p7 = scmp.ne.s32.totalorder %s522_s13, 2 }
  0x3d   : > { %v201_v16 = vand.u32 127, %v176_v15  ;;  %v177_v34 = vshrl.u32 %v176_v15, 7  ;;  %v228_v52 = vld [vmem:[#allocation2] sm:$0x1] }
  0x3e   : > { %v182_v6 = vmax.f32 %v181_v4, %v173_v3 }
  0x3f   : > { %v202_v17 = vadd.s32 128, %v201_v16  ;;  %v203_v23 = vadd.s32 256, %v201_v16  ;;  %v179_v39 = vadd.s32 %v178_v35, %v177_v34 }
  0x40   : > { %183 = vmax.xlane.f32.xlu0 %v182_v6 }
  0x41   : > { %vm180_vm4 = vcmp.lt.s32.totalorder %v179_v39, 20 }
  0x56   : > { %205 = vperm.xlu0 %379, %v174_v7  }
  0xcd   : > { %v184_v8 = vpop.xlane.xlu0 %183 }
  0xce   : > { %v185_v9 = vsub.f32 %v171_v1, %v184_v8  ;;  %v186_v10 = vsub.f32 %v172_v2, %v184_v8  ;;  %v187_v11 = vsub.f32 %v173_v3, %v184_v8 }
  0xd0   : > { %v188_v12 = vmul.f32 1.442695, %v185_v9  ;;  %v190_v13 = vmul.f32 1.442695, %v186_v10  ;;  %v192_v14 = vmul.f32 1.442695, %v187_v11  ;;  %v218_v25 = vadd.f32 %v186_v10, %v185_v9 }
  0xd2   : > { %380 = vpow2.f32 %v188_v12  ;;  %v219_v28 = vadd.f32 %v218_v25, %v187_v11 }
  0xd3   : > { %382 = vpow2.f32 %v190_v13 }
  0xd4   : > { %384 = vpow2.f32 %v192_v14 }
  0xd5   : > { %v206_v18 = vpop.permute.xlu0 %205 }
  0xd6   : > { %vm207_vm1 = vcmp.eq.s32.totalorder %v201_v16, %v206_v18  ;;  %vm208_vm2 = vcmp.eq.s32.totalorder %v202_v17, %v206_v18  ;;  %vm209_vm3 = vcmp.eq.s32.totalorder %v203_v23, %v206_v18 }
  0xd7   : > { %v210_v26 = vsel %vm207_vm1, %v185_v9, 0.0  ;;  %v211_v27 = vsel %vm208_vm2, %v186_v10, 0.0  ;;  %v212_v30 = vsel %vm209_vm3, %v187_v11, 0.0 }
  0xd8   : > { %v213_v29 = vadd.f32 %v211_v27, %v210_v26 }
  0xda   : > { %v214_v31 = vadd.f32 %v213_v29, %v212_v30 }
  0xdc   : > { %v381_v19 = vpop.eup %380 }
  0xdd   : > { %v383_v20 = vpop.eup %382 }
  0xde   : > { %v194_v21 = vadd.f32 %v383_v20, %v381_v19  ;;  %v385_v22 = vpop.eup %384 }
  0xe0   : > { %v195_v24 = vadd.f32 %v385_v22, %v194_v21 }
  0xe2   : > { %196 = vadd.xlane.f32.xlu1 %v195_v24 }
  0xe6   : > { %220 = vadd.xlane.f32.xlu1 %v219_v28 }
  0xea   : > { %215 = vadd.xlane.f32.xlu1 %v214_v31 }
 0x16f   : > { %v197_v32 = vpop.xlane.xlu1 %196 }
 0x170   : > { %386 = vlog2.f32 %v197_v32 }
 0x173   : > { %v221_v33 = vpop.xlane.xlu1 %220 }
 0x174   : > { %v222_v38 = vmul.f32 0.0026041667, %v221_v33 }
 0x177   : > { %v216_v40 = vpop.xlane.xlu1 %215 }
 0x17a   : > { %v387_v36 = vpop.eup %386 }
 0x17b   : > { %v199_v37 = vmul.f32 0.6931472, %v387_v36 }
 0x17d   : > { %v223_v41 = vsub.f32 %v199_v37, %v222_v38  ;;  %v217_v42 = vsub.f32 %v199_v37, %v216_v40 }
 0x17f   : > { %v225_v43 = vmul.f32 0.1, %v223_v41  ;;  %v224_v44 = vmul.f32 0.9, %v217_v42 }
 0x181   : > { %v226_v45 = vadd.f32 %v225_v43, %v224_v44 }
 0x183   : > { %v227_v46 = vsel %vm180_vm4, %v226_v45, 0.0 }
 0x184   : > { %v229_v47 = vrot.slane %v227_v46, 4 }
 0x186   : > { %v230_v48 = vadd.f32 %v229_v47, %v227_v46 }
 0x188   : > { %v231_v49 = vrot.slane %v230_v48, 2 }
 0x18a   : > { %v232_v50 = vadd.f32 %v231_v49, %v230_v48 }
 0x18c   : > { %v233_v51 = vrot.slane %v232_v50, 1  ;;  %241 = sbr.rel (%p323_p7) target bundleno = 413 (0x19d), region = 40 }
 0x18e   : > { %v234_v53 = vadd.f32 %v233_v51, %v232_v50 }
 0x190   : > { %v235_v54 = vadd.f32 %v234_v53, %v228_v52 }
 0x192   : > { %237 = vst.msk [vmem:[#allocation2] sm:$0x1] %vm236_vm5, %v235_v54 }
 0x199   : > { %v242_v55 = vld [vmem:[#allocation2] sm:$0x1] }
 0x19a   : > { %v244_v56 = vmul.f32 0.05, %v242_v55 }
 0x19c   : > { %245 = vst.msk [vmem:[#allocation6] sm:$0x1] %vm236_vm5, %v244_v56 }
 0x19d PF: > { %p342_p4 = scmp.eq.s32.totalorder %s522_s13, 2  ;;  %s487_s26 = smov [#allocation6]  }
 0x19e   : > { %s253_s27 = sshll.u32 %s487_s26, 4  ;;  %s254_s27 = int_to_ptr.vmem [resolvable:$true] %s253_s27 }
 0x19f   : > { %s418_s28 = scalar_lea.vmem %s254_s27, 16  ;;  %s424_s29 = scalar_lea.vmem %s254_s27, 32 }
 0x1a0   : > { %p419_p5 = scmp.ne.s32.totalorder %s254_s27, %s418_s28  ;;  %p425_p12 = scmp.lt.s32.totalorder %s254_s27, %s254_s27 }
 0x1a1   : > { %p426_p0 = scmp.lt.s32.totalorder %s424_s29, %s418_s28 }
 0x1a2   : > { %p420_p6 = pnand %p419_p5, %p342_p4 }
 0x1a3   : > { %p427_p1 = por %p426_p0, %p425_p12 }
 0x1a4   : > { %p421_p10 = pneg %p420_p6 }
 0x1a6   : > { %p428_p2 = pnand %p427_p1, %p421_p10 }
 0x1a8   : > { %431 = shalt.err (!%p428_p2)
}
 0x1a9   : > { %s432_s4 = scalar_lea.hbm %s636_s2, 16 }
 0x1aa   : > { %p433_p13 = scmp.ne.s32.totalorder %s636_s2, %s432_s4  ;;  %p438_p9 = scmp.lt.u32.totalorder %s432_s4, %s636_s2 }
 0x1ac   : > { %p434_p3 = pnand %p433_p13, %p342_p4 }
 0x1ae   : > { %p435_p11 = pneg %p434_p3 }
 0x1b0   : > { %p440_p8 = pnand %p438_p9, %p435_p11 }
 0x1b2   : > { %443 = shalt.err (!%p440_p8)
}
 0x1b3   : > { %334 = dma.vmem_to_hbm [thread:$0]  (%p342_p4), %s254_s27, 16, %s636_s2, [#allocation5]  }
 0x1b4   : > { %465 = dma.done.wait (%p342_p4), [#allocation5], 16  }
 0x1b5   : > { %467 = vsyncadd (%p342_p4), [#allocation5], 4294967280 }
 0x1b6 PF: > { %p13_p7 = scmp.ge.s32.totalorder %s525_s14, 5   ;;  %s640_s9 = smov %s474_s10 }
 0x1b7   : > { %s641_s10 = smov %s478_s11  ;;  %s642_s11 = smov %s535_s17 }
 0x1b8   : > { %s643_s12 = smov %s525_s14  ;;  %15 = sbr.rel (!%p13_p7) target bundleno = 4 (0x4), region = 76 }
 0x1bf   :  { %266 = vsyncpa [#allocation4], 1 }
 0x1c0   :  { %268 = vsyncpa [#allocation4 + $0x1], 1 }
 0x1c1   :  { %269 = vsyncpa [#allocation5], 1 }
 0x1c2   :  { %271 = vsyncpa [#allocation5 + $0x1], 1 }

</bundles_post_ra>
